<compile_context>
chip_gen: v7x
topology: tpu7x:2x2x1
jax: 0.10.0
libtpu: 0.0.40
codegen_flags: <defaults>
</compile_context>

<pallas_src>
import jax
import jax.numpy as jnp
from jax import lax
from jax.experimental import pallas as pl
from jax.experimental.pallas import tpu as pltpu

LATENT_DIMS = 3
IN_FEATURES = 32
HIDDEN = 16
OUT_FEATURES = 32


def _round_up(n, m):
    return ((n + m - 1) // m) * m


def _elu(v):
    # exact ELU(alpha=1); min() keeps the untaken exp branch from overflowing.
    return jnp.where(v > 0, v, jnp.exp(jnp.minimum(v, 0.0)) - 1.0)


def _vae_kernel(x_ref, eps_ref, w1_ref, b1_ref, w2_ref, b2_ref, w3_ref, b3_ref,
                w4_ref, b4_ref, w5t_ref, b5_ref, out_ref):
    f32 = jnp.float32
    x = x_ref[...].astype(f32)                                          # (tb, 32)

    # h1^T = W1 @ x^T : contract the last dim of both operands (standard
    # dot(a, b.T) MXU pattern) -> batch-on-lanes intermediates, no transpose.
    h1 = _elu(lax.dot_general(w1_ref[...], x, (((1,), (1,)), ((), ())),
                              preferred_element_type=f32) + b1_ref[...])  # (16, tb)

    mu = jnp.dot(w2_ref[...], h1, preferred_element_type=f32) + b2_ref[...]        # (3, tb)
    log_sigma = jnp.dot(w3_ref[...], h1, preferred_element_type=f32) + b3_ref[...]  # (3, tb)
    sigma = jnp.exp(log_sigma)                                          # (3, tb)
    z = mu + sigma * eps_ref[...]                                       # reparameterization

    h2 = _elu(jnp.dot(w4_ref[...], z, preferred_element_type=f32)
              + b4_ref[...])                                            # (16, tb)

    # out = h2^T @ W5^T : contract dim 0 of both operands so the result lands
    # directly in the natural (tb, 32) output layout (no transpose-back).
    out = lax.dot_general(h2, w5t_ref[...], (((0,), (0,)), ((), ())),
                          preferred_element_type=f32) + b5_ref[...]     # (tb, 32)
    out_ref[...] = out.astype(out_ref.dtype)


def vae_forward(x, params, *, eps=None, key=None, block_batch=8192):
    """Forward pass of VariationalAutoencoder.

    x: (B, 32) float32 or bfloat16 (all matmuls/elementwise run in f32).
    If `eps` is given it must be (B, LATENT_DIMS) and is used verbatim
    (deterministic path for testing). Otherwise N(0,1) noise is drawn with
    jax.random using `key` (production path). Returns (B, 32) in x.dtype.

    block_batch: batch tile (multiple of 128 recommended). 8192 keeps the
    double-buffered footprint ~4 MiB (safe on v5e's 16 MiB scoped-VMEM
    default); on v7x use 16384-32768 plus vmem_limit_bytes for peak BW.
    """
    B = x.shape[0]
    weights = tuple(params)  # (w1,b1, w2,b2, w3,b3, w4,b4, w5t,b5)

    tb = min(block_batch, _round_up(max(B, 8), 8))
    grid_n = pl.cdiv(B, tb)
    n_total = grid_n * tb

    if eps is None:
        if key is None:
            key = jax.random.PRNGKey(0)
        # TODO(synk): on a real-TPU-only build this HBM stream (~5% of traffic)
        # can be removed with pltpu.prng_seed/stateful_normal; kept host-side
        # here so the kernel also runs under the CPU interpreter.
        eps_t = jax.random.normal(key, (LATENT_DIMS, n_total), dtype=jnp.float32)
    else:
        eps_t = eps.astype(jnp.float32).T                               # (3, B)
        if n_total != B:
            eps_t = jnp.pad(eps_t, ((0, 0), (0, n_total - B)))

    x_spec = pl.BlockSpec((tb, IN_FEATURES), lambda i: (i, 0))
    eps_spec = pl.BlockSpec((LATENT_DIMS, tb), lambda i: (0, i))
    # Tiny weights/biases: whole-array blocks with a constant index map stay
    # VMEM-resident across all grid steps.
    w_specs = [pl.BlockSpec(w.shape, lambda i: (0, 0)) for w in weights]
    out_spec = pl.BlockSpec((tb, OUT_FEATURES), lambda i: (i, 0))

    out = pl.pallas_call(
        _vae_kernel,
        grid=(grid_n,),
        in_specs=[x_spec, eps_spec, *w_specs],
        out_specs=out_spec,
        out_shape=jax.ShapeDtypeStruct((B, OUT_FEATURES), x.dtype),
        compiler_params=pltpu.CompilerParams(
            dimension_semantics=("parallel",)),  # batch blocks are independent
    )(x, eps_t, *weights)
    return out


def init_params(key, dtype=jnp.float32):
    """nn.Linear-style init. Weights are stored so the kernel never transposes
    a large tile: w1..w4 as (out_features, in_features); w5 pre-transposed."""
    ks = jax.random.split(key, 10)

    def uniform(k, shape, fan_in):
        bound = 1.0 / jnp.sqrt(float(fan_in))
        return jax.random.uniform(k, shape, jnp.float32, -bound, bound).astype(dtype)

    w1 = uniform(ks[0], (HIDDEN, IN_FEATURES), IN_FEATURES)
    b1 = uniform(ks[1], (HIDDEN, 1), IN_FEATURES)
    w2 = uniform(ks[2], (LATENT_DIMS, HIDDEN), HIDDEN)
    b2 = uniform(ks[3], (LATENT_DIMS, 1), HIDDEN)
    w3 = uniform(ks[4], (LATENT_DIMS, HIDDEN), HIDDEN)
    b3 = uniform(ks[5], (LATENT_DIMS, 1), HIDDEN)
    w4 = uniform(ks[6], (HIDDEN, LATENT_DIMS), LATENT_DIMS)
    b4 = uniform(ks[7], (HIDDEN, 1), LATENT_DIMS)
    w5t = uniform(ks[8], (OUT_FEATURES, HIDDEN), HIDDEN).T  # (16, 32) pre-transposed
    b5 = uniform(ks[9], (1, OUT_FEATURES), HIDDEN)
    return (w1, b1, w2, b2, w3, b3, w4, b4, w5t, b5)


def reference_forward(x, params, eps):
    """Pure-JAX reference with identical math (row-major layout)."""
    w1, b1, w2, b2, w3, b3, w4, b4, w5t, b5 = params
    h1 = _elu(x @ w1.T + b1[:, 0])
    mu = h1 @ w2.T + b2[:, 0]
    sigma = jnp.exp(h1 @ w3.T + b3[:, 0])
    z = mu + sigma * eps
    h2 = _elu(z @ w4.T + b4[:, 0])
    return h2 @ w5t + b5[0]


if __name__ == "__main__":
    key = jax.random.PRNGKey(0)
    k_params, k_x, k_eps, k_noise = jax.random.split(key, 4)

    B = 16  # small demo batch
    params = init_params(k_params)
    x = jax.random.normal(k_x, (B, IN_FEATURES), dtype=jnp.float32)
    eps = jax.random.normal(k_eps, (B, LATENT_DIMS), dtype=jnp.float32)

    # 1) deterministic-eps path: exact numerical check vs the pure-JAX reference.
    y_det = vae_forward(x, params, eps=eps)
    jax.block_until_ready(y_det)
    y_ref = reference_forward(x, params, eps)
    assert y_det.shape == (B, OUT_FEATURES)
    max_err = float(jnp.max(jnp.abs(y_det - y_ref)))
    assert jnp.allclose(y_det, y_ref, atol=1e-4, rtol=1e-4), max_err

    # 2) production path: N(0,1) noise drawn outside the kernel with jax.random.
    y_rng = vae_forward(x, params, key=k_noise)
    jax.block_until_ready(y_rng)
    assert y_rng.shape == (B, OUT_FEATURES)
    assert bool(jnp.all(jnp.isfinite(y_rng)))

    print("KERNEL_OK")
</pallas_src>

<mosaic_0001>
module attributes {stable_mosaic.version = 11 : i64} {
  func.func @_vae_kernel(%arg0: i32, %arg1: memref<16x32xf32, #tpu.memory_space<vmem>>, %arg2: memref<3x16xf32, #tpu.memory_space<vmem>>, %arg3: memref<16x32xf32, #tpu.memory_space<vmem>>, %arg4: memref<16x1xf32, #tpu.memory_space<vmem>>, %arg5: memref<3x16xf32, #tpu.memory_space<vmem>>, %arg6: memref<3x1xf32, #tpu.memory_space<vmem>>, %arg7: memref<3x16xf32, #tpu.memory_space<vmem>>, %arg8: memref<3x1xf32, #tpu.memory_space<vmem>>, %arg9: memref<16x3xf32, #tpu.memory_space<vmem>>, %arg10: memref<16x1xf32, #tpu.memory_space<vmem>>, %arg11: memref<16x32xf32, #tpu.memory_space<vmem>>, %arg12: memref<1x32xf32, #tpu.memory_space<vmem>>, %arg13: memref<16x32xf32, #tpu.memory_space<vmem>>) attributes {dimension_semantics = [#tpu.dimension_semantics<parallel>], iteration_bounds = array<i64: 1>, scalar_prefetch = 0 : i64, scratch_operands = 0 : i64, tpu.core_type = #tpu.core_type<tc>, window_params = [{transform_indices = @transform_0, window_bounds = array<i64: 16, 32>}, {transform_indices = @transform_1, window_bounds = array<i64: 3, 16>}, {pipeline_mode = #tpu.pipeline_mode<synchronous>, transform_indices = @transform_2, window_bounds = array<i64: 16, 32>}, {pipeline_mode = #tpu.pipeline_mode<synchronous>, transform_indices = @transform_3, window_bounds = array<i64: 16, 1>}, {pipeline_mode = #tpu.pipeline_mode<synchronous>, transform_indices = @transform_4, window_bounds = array<i64: 3, 16>}, {pipeline_mode = #tpu.pipeline_mode<synchronous>, transform_indices = @transform_5, window_bounds = array<i64: 3, 1>}, {pipeline_mode = #tpu.pipeline_mode<synchronous>, transform_indices = @transform_6, window_bounds = array<i64: 3, 16>}, {pipeline_mode = #tpu.pipeline_mode<synchronous>, transform_indices = @transform_7, window_bounds = array<i64: 3, 1>}, {pipeline_mode = #tpu.pipeline_mode<synchronous>, transform_indices = @transform_8, window_bounds = array<i64: 16, 3>}, {pipeline_mode = #tpu.pipeline_mode<synchronous>, transform_indices = @transform_9, window_bounds = array<i64: 16, 1>}, {pipeline_mode = #tpu.pipeline_mode<synchronous>, transform_indices = @transform_10, window_bounds = array<i64: 16, 32>}, {pipeline_mode = #tpu.pipeline_mode<synchronous>, transform_indices = @transform_11, window_bounds = array<i64: 1, 32>}, {transform_indices = @transform_12, window_bounds = array<i64: 16, 32>}]} {
    %c0 = arith.constant 0 : index
    %c0_0 = arith.constant 0 : index
    %0 = vector.load %arg1[%c0, %c0_0] : memref<16x32xf32, #tpu.memory_space<vmem>>, vector<16x32xf32>
    %c0_1 = arith.constant 0 : index
    %c0_2 = arith.constant 0 : index
    %1 = vector.load %arg3[%c0_1, %c0_2] : memref<16x32xf32, #tpu.memory_space<vmem>>, vector<16x32xf32>
    %cst = arith.constant dense<0.000000e+00> : vector<16x16xf32>
    %2 = tpu.matmul %1, %0, %cst {dimension_numbers = #tpu.dot_dimension_numbers<[1], [1], [0], [0], [0, 0, 1, 0], [], []>} : vector<16x32xf32>, vector<16x32xf32>, vector<16x16xf32> -> vector<16x16xf32>
    %c0_3 = arith.constant 0 : index
    %c0_4 = arith.constant 0 : index
    %3 = vector.load %arg4[%c0_3, %c0_4] : memref<16x1xf32, #tpu.memory_space<vmem>>, vector<16x1xf32>
    %4 = vector.broadcast %3 : vector<16x1xf32> to vector<16x16xf32>
    %5 = arith.addf %2, %4 : vector<16x16xf32>
    %cst_5 = arith.constant 0.000000e+00 : f32
    %6 = vector.broadcast %cst_5 : f32 to vector<16x16xf32>
    %7 = arith.cmpf ogt, %5, %6 : vector<16x16xf32>
    %cst_6 = arith.constant 0.000000e+00 : f32
    %8 = vector.broadcast %cst_6 : f32 to vector<16x16xf32>
    %9 = arith.minimumf %5, %8 : vector<16x16xf32>
    %10 = math.exp %9 : vector<16x16xf32>
    %cst_7 = arith.constant 1.000000e+00 : f32
    %11 = vector.broadcast %cst_7 : f32 to vector<16x16xf32>
    %12 = arith.subf %10, %11 : vector<16x16xf32>
    %13 = arith.select %7, %5, %12 : vector<16x16xi1>, vector<16x16xf32>
    %c0_8 = arith.constant 0 : index
    %c0_9 = arith.constant 0 : index
    %14 = vector.load %arg5[%c0_8, %c0_9] : memref<3x16xf32, #tpu.memory_space<vmem>>, vector<3x16xf32>
    %cst_10 = arith.constant dense<0.000000e+00> : vector<3x16xf32>
    %15 = tpu.matmul %14, %13, %cst_10 {dimension_numbers = #tpu.dot_dimension_numbers<[1], [0], [0], [1], [0, 0, 1, 1], [], []>} : vector<3x16xf32>, vector<16x16xf32>, vector<3x16xf32> -> vector<3x16xf32>
    %c0_11 = arith.constant 0 : index
    %c0_12 = arith.constant 0 : index
    %16 = vector.load %arg6[%c0_11, %c0_12] : memref<3x1xf32, #tpu.memory_space<vmem>>, vector<3x1xf32>
    %17 = vector.broadcast %16 : vector<3x1xf32> to vector<3x16xf32>
    %18 = arith.addf %15, %17 : vector<3x16xf32>
    %c0_13 = arith.constant 0 : index
    %c0_14 = arith.constant 0 : index
    %19 = vector.load %arg7[%c0_13, %c0_14] : memref<3x16xf32, #tpu.memory_space<vmem>>, vector<3x16xf32>
    %cst_15 = arith.constant dense<0.000000e+00> : vector<3x16xf32>
    %20 = tpu.matmul %19, %13, %cst_15 {dimension_numbers = #tpu.dot_dimension_numbers<[1], [0], [0], [1], [0, 0, 1, 1], [], []>} : vector<3x16xf32>, vector<16x16xf32>, vector<3x16xf32> -> vector<3x16xf32>
    %c0_16 = arith.constant 0 : index
    %c0_17 = arith.constant 0 : index
    %21 = vector.load %arg8[%c0_16, %c0_17] : memref<3x1xf32, #tpu.memory_space<vmem>>, vector<3x1xf32>
    %22 = vector.broadcast %21 : vector<3x1xf32> to vector<3x16xf32>
    %23 = arith.addf %20, %22 : vector<3x16xf32>
    %24 = math.exp %23 : vector<3x16xf32>
    %c0_18 = arith.constant 0 : index
    %c0_19 = arith.constant 0 : index
    %25 = vector.load %arg2[%c0_18, %c0_19] : memref<3x16xf32, #tpu.memory_space<vmem>>, vector<3x16xf32>
    %26 = arith.mulf %24, %25 : vector<3x16xf32>
    %27 = arith.addf %18, %26 : vector<3x16xf32>
    %c0_20 = arith.constant 0 : index
    %c0_21 = arith.constant 0 : index
    %28 = vector.load %arg9[%c0_20, %c0_21] : memref<16x3xf32, #tpu.memory_space<vmem>>, vector<16x3xf32>
    %cst_22 = arith.constant dense<0.000000e+00> : vector<16x16xf32>
    %29 = tpu.matmul %28, %27, %cst_22 {dimension_numbers = #tpu.dot_dimension_numbers<[1], [0], [0], [1], [0, 0, 1, 1], [], []>} : vector<16x3xf32>, vector<3x16xf32>, vector<16x16xf32> -> vector<16x16xf32>
    %c0_23 = arith.constant 0 : index
    %c0_24 = arith.constant 0 : index
    %30 = vector.load %arg10[%c0_23, %c0_24] : memref<16x1xf32, #tpu.memory_space<vmem>>, vector<16x1xf32>
    %31 = vector.broadcast %30 : vector<16x1xf32> to vector<16x16xf32>
    %32 = arith.addf %29, %31 : vector<16x16xf32>
    %cst_25 = arith.constant 0.000000e+00 : f32
    %33 = vector.broadcast %cst_25 : f32 to vector<16x16xf32>
    %34 = arith.cmpf ogt, %32, %33 : vector<16x16xf32>
    %cst_26 = arith.constant 0.000000e+00 : f32
    %35 = vector.broadcast %cst_26 : f32 to vector<16x16xf32>
    %36 = arith.minimumf %32, %35 : vector<16x16xf32>
    %37 = math.exp %36 : vector<16x16xf32>
    %cst_27 = arith.constant 1.000000e+00 : f32
    %38 = vector.broadcast %cst_27 : f32 to vector<16x16xf32>
    %39 = arith.subf %37, %38 : vector<16x16xf32>
    %40 = arith.select %34, %32, %39 : vector<16x16xi1>, vector<16x16xf32>
    %c0_28 = arith.constant 0 : index
    %c0_29 = arith.constant 0 : index
    %41 = vector.load %arg11[%c0_28, %c0_29] : memref<16x32xf32, #tpu.memory_space<vmem>>, vector<16x32xf32>
    %cst_30 = arith.constant dense<0.000000e+00> : vector<16x32xf32>
    %42 = tpu.matmul %40, %41, %cst_30 {dimension_numbers = #tpu.dot_dimension_numbers<[0], [0], [1], [1], [0, 1, 1, 1], [], []>} : vector<16x16xf32>, vector<16x32xf32>, vector<16x32xf32> -> vector<16x32xf32>
    %c0_31 = arith.constant 0 : index
    %c0_32 = arith.constant 0 : index
    %43 = vector.load %arg12[%c0_31, %c0_32] : memref<1x32xf32, #tpu.memory_space<vmem>>, vector<1x32xf32>
    %44 = vector.broadcast %43 : vector<1x32xf32> to vector<16x32xf32>
    %45 = arith.addf %42, %44 : vector<16x32xf32>
    %c0_33 = arith.constant 0 : index
    %c0_34 = arith.constant 0 : index
    %46 = vector.load %arg13[%c0_33, %c0_34] : memref<16x32xf32, #tpu.memory_space<vmem>>, vector<16x32xf32>
    tpu.vector_store %arg13[%c0_33, %c0_34], %45 {strides = array<i32>} : memref<16x32xf32, #tpu.memory_space<vmem>>, vector<16x32xf32>,
    return
  }
  func.func @transform_0(%arg0: i32) -> (i32, i32) {
    %c0_i32 = arith.constant 0 : i32
    %c0_i32_0 = arith.constant 0 : i32
    return %arg0, %c0_i32 : i32, i32
  }
  func.func @transform_1(%arg0: i32) -> (i32, i32) {
    %c0_i32 = arith.constant 0 : i32
    %c0_i32_0 = arith.constant 0 : i32
    return %c0_i32, %arg0 : i32, i32
  }
  func.func @transform_2(%arg0: i32) -> (i32, i32) {
    %c0_i32 = arith.constant 0 : i32
    %c0_i32_0 = arith.constant 0 : i32
    %c0_i32_1 = arith.constant 0 : i32
    return %c0_i32, %c0_i32_0 : i32, i32
  }
  func.func @transform_3(%arg0: i32) -> (i32, i32) {
    %c0_i32 = arith.constant 0 : i32
    %c0_i32_0 = arith.constant 0 : i32
    %c0_i32_1 = arith.constant 0 : i32
    return %c0_i32, %c0_i32_0 : i32, i32
  }
  func.func @transform_4(%arg0: i32) -> (i32, i32) {
    %c0_i32 = arith.constant 0 : i32
    %c0_i32_0 = arith.constant 0 : i32
    %c0_i32_1 = arith.constant 0 : i32
    return %c0_i32, %c0_i32_0 : i32, i32
  }
  func.func @transform_5(%arg0: i32) -> (i32, i32) {
    %c0_i32 = arith.constant 0 : i32
    %c0_i32_0 = arith.constant 0 : i32
    %c0_i32_1 = arith.constant 0 : i32
    return %c0_i32, %c0_i32_0 : i32, i32
  }
  func.func @transform_6(%arg0: i32) -> (i32, i32) {
    %c0_i32 = arith.constant 0 : i32
    %c0_i32_0 = arith.constant 0 : i32
    %c0_i32_1 = arith.constant 0 : i32
    return %c0_i32, %c0_i32_0 : i32, i32
  }
  func.func @transform_7(%arg0: i32) -> (i32, i32) {
    %c0_i32 = arith.constant 0 : i32
    %c0_i32_0 = arith.constant 0 : i32
    %c0_i32_1 = arith.constant 0 : i32
    return %c0_i32, %c0_i32_0 : i32, i32
  }
  func.func @transform_8(%arg0: i32) -> (i32, i32) {
    %c0_i32 = arith.constant 0 : i32
    %c0_i32_0 = arith.constant 0 : i32
    %c0_i32_1 = arith.constant 0 : i32
    return %c0_i32, %c0_i32_0 : i32, i32
  }
  func.func @transform_9(%arg0: i32) -> (i32, i32) {
    %c0_i32 = arith.constant 0 : i32
    %c0_i32_0 = arith.constant 0 : i32
    %c0_i32_1 = arith.constant 0 : i32
    return %c0_i32, %c0_i32_0 : i32, i32
  }
  func.func @transform_10(%arg0: i32) -> (i32, i32) {
    %c0_i32 = arith.constant 0 : i32
    %c0_i32_0 = arith.constant 0 : i32
    %c0_i32_1 = arith.constant 0 : i32
    return %c0_i32, %c0_i32_0 : i32, i32
  }
  func.func @transform_11(%arg0: i32) -> (i32, i32) {
    %c0_i32 = arith.constant 0 : i32
    %c0_i32_0 = arith.constant 0 : i32
    %c0_i32_1 = arith.constant 0 : i32
    return %c0_i32, %c0_i32_0 : i32, i32
  }
  func.func @transform_12(%arg0: i32) -> (i32, i32) {
    %c0_i32 = arith.constant 0 : i32
    %c0_i32_0 = arith.constant 0 : i32
    return %arg0, %c0_i32 : i32, i32
  }
}

</mosaic_0001>

<bundles_post_ra>
// kernel: tpu_custom_call.1
= control target key start
LH: loop header
LB: loop body
LE: loop exit
PB: predicated region body
PF: predicated region fallthrough
CT: control target
= control target key end

     0   :  { %vm58_vm0 = vcmask 261120   ;;  %v701_v4 = vmov 0   ;;  %s853_s0 = inlined_call_operand.vmem [shape: f32[16,32], index: 0, kind: input, shape index: {}]   ;;  %s854_s1 = inlined_call_operand.vmem [shape: f32[3,16], index: 1, kind: input, shape index: {}]   ;;  %s855_s2 = inlined_call_operand.vmem [shape: f32[16,32], index: 2, kind: input, shape index: {}]   ;;  %s856_s3 = inlined_call_operand.vmem [shape: f32[16,1], index: 3, kind: input, shape index: {}]   ;;  %s857_s4 = inlined_call_operand.vmem [shape: f32[3,16], index: 4, kind: input, shape index: {}]   ;;  %s858_s5 = inlined_call_operand.vmem [shape: f32[3,1], index: 5, kind: input, shape index: {}]   ;;  %s859_s6 = inlined_call_operand.vmem [shape: f32[3,16], index: 6, kind: input, shape index: {}]   ;;  %s860_s7 = inlined_call_operand.vmem [shape: f32[3,1], index: 7, kind: input, shape index: {}]   ;;  %s861_s8 = inlined_call_operand.vmem [shape: f32[16,3], index: 8, kind: input, shape index: {}]   ;;  %s862_s9 = inlined_call_operand.vmem [shape: f32[16,1], index: 9, kind: input, shape index: {}]   ;;  %s863_s10 = inlined_call_operand.vmem [shape: f32[16,32], index: 10, kind: input, shape index: {}]   ;;  %s864_s11 = inlined_call_operand.vmem [shape: f32[1,32], index: 11, kind: input, shape index: {}]   ;;  %s865_s12 = inlined_call_operand.hbm [shape: f32[16,32], index: 12, kind: output, shape index: {}]  }
   0x1   :  { %v42_v0 = vld [vmem:[%s853_s0] sm:$0xff]  ;;  %v43_v1 = vld [vmem:[%s853_s0 + $0x8] sm:$0xff]  ;;  %vm643_vm1 = vmpackc.low %vm58_vm0, %vm58_vm0  ;;  %665 = vset.pattern.permute.xlu0 %v701_v4  ;;  %666 = vset.pattern.permute.xlu1 %v701_v4 }
   0x2   :  { %v44_v2 = vld [vmem:[%s855_s2] sm:$0xff]  ;;  %v642_v3 = vpack.c.bf16 %v43_v1, %v42_v0 }
   0x3   :  { %613 = vmatprep.mubr.msk.f32.mxu0 %vm58_vm0, %v44_v2  ;;  %v46_v5 = vld [vmem:[%s856_s3] sm:$0xff] }
   0x4   :  { %50 = vperm.xlu0 %665, %v46_v5  }
   0x5   :  { %17 = vsyncpa [#allocation3], 0  ;;  %644 = vmatprep.subr.msk.bf16.mxu0 %vm643_vm1, %v642_v3  ;;  %v47_v6 = vld [vmem:[%s856_s3 + $0x8] sm:$0xff]  ;;  %v326_v7 = vld [vmem:[%s862_s9] sm:$0xff]  ;;  %v702_v9 = vmov 0.0|0.0   ;;  %vm703_vm2 = vmmov 0  }
   0x6   :  { %647 = vmatpush3.bf16.xpose.msk.msra.mxu0 %vm643_vm1, %v642_v3  ;;  %v45_v8 = vld [vmem:[%s855_s2 + $0x8] sm:$0xff]  ;;  %648 = vmatprep.subr.bf16.mxu1 %v702_v9  ;;  %v704_v10 = vmov 0.0   ;;  %v240_v11 = vld [vmem:[%s860_s7] sm:$0x7]  ;;  %vm165_vm5 = vcmask 130048   ;;  %vm338_vm6 = vcmask 23552  }
   0x7   :  { %620 = vmatprep.mubr.msk.f32.mxu1 %vm703_vm2, %v704_v10  ;;  %243 = vperm.xlu1 %666, %v240_v11   ;;  %v159_v12 = vld [vmem:[%s858_s5] sm:$0x7]  ;;  %v327_v13 = vld [vmem:[%s862_s9 + $0x8] sm:$0xff]  ;;  %vm345_vm7 = vcmask 1042432  }
   0x8   :  { %55 = vperm.xlu0 %665, %v47_v6   ;;  %v158_v31 = vld [vmem:[%s857_s4] sm:$0x7]  ;;  %v325_v47 = vld [vmem:[%s861_s8 + $0x8] sm:$0xff] }
   0x9   :  { %v239_v32 = vld [vmem:[%s859_s6] sm:$0x7]  ;;  %v437_v62 = vld [vmem:[%s863_s10 + $0x8] sm:$0xff] }
   0xa   :  { %v324_v33 = vld [vmem:[%s861_s8] sm:$0xff] }
   0xb   :  { %162 = vperm.xlu1 %666, %v159_v12   ;;  %v321_v42 = vld [vmem:[%s854_s1] sm:$0x7] }
   0xc   :  { %330 = vperm.xlu0 %665, %v326_v7   ;;  %v436_v61 = vld [vmem:[%s863_s10] sm:$0xff]  ;;  %s705_s10 = smov [#allocation2]  }
   0xd   :  { %614 = vmatmul.mubr.msk.f32.vlgmr.msra.gmra.mrb[0].mxu0 %vm58_vm0, %v45_v8  ;;  %v654_v1 = vpack.c.bf16 %v437_v62, %v436_v61  ;;  %v589_v5 = vld [vmem:[%s864_s11] ss:$0 sm:$0xff]  ;;  %s565_s0 = sshll.u32 %s705_s10, 4  ;;  %s566_s0 = int_to_ptr.vmem [resolvable:$true] %s565_s0 }
   0xe   :  { %632 = vmatprep.mubr.msk.f32.mxu0 %vm338_vm6, %v324_v33  ;;  %s677_s29 = scalar_lea.vmem %s566_s0, 256  ;;  %p682_p1 = scmp.lt.s32.totalorder %s566_s0, %s566_s0 }
   0xf   :  { %335 = vperm.xlu1 %666, %v327_v13   ;;  %p678_p0 = scmp.ne.s32.totalorder %s566_s0, %s677_s29  ;;  %p683_p2 = scmp.lt.s32.totalorder %s677_s29, %s677_s29 }
  0x11   :  { %p684_p3 = por %p683_p2, %p682_p1 }
  0x13   :  { %p685_p4 = pnand %p684_p3, %p678_p0 }
  0x83   :  { %v51_v14 = vpop.permute.xlu0 %50 }
  0x86   :  { %v244_v36 = vpop.permute.xlu1 %243 }
  0x87   :  { %v56_v15 = vpop.permute.xlu0 %55 }
  0x8a   :  { %v163_v41 = vpop.permute.xlu1 %162 }
  0x8b   :  { %v331_v50 = vpop.permute.xlu0 %330 }
  0x8e   :  { %v336_v48 = vpop.permute.xlu1 %335 }
  0xe0   :  { %v615_v16 = vpop.f32.mrb[0].mxu0 }
  0xe1   :  { %v143_v17 = vadd.f32 %v615_v16, %v56_v15  ;;  %v137_v18 = vpop.f32.mrb[1].mxu0 }
  0xe2   :  { %v138_v19 = vadd.f32 %v137_v18, %v51_v14 }
  0xe3   :  { %v149_v20 = vmin.f32 %v143_v17, 0.0  ;;  %vm147_vm3 = vcmp.gt.f32.partialorder %v143_v17, 0.0 }
  0xe4   :  { %v148_v21 = vmin.f32 %v138_v19, 0.0  ;;  %vm146_vm4 = vcmp.gt.f32.partialorder %v138_v19, 0.0 }
  0xe5   :  { %v152_v22 = vmul.f32 1.442695, %v149_v20 }
  0xe6   :  { %v150_v23 = vmul.f32 1.442695, %v148_v21 }
  0xe7   :  { %667 = vpow2.f32 %v152_v22 }
  0xe8   :  { %669 = vpow2.f32 %v150_v23 }
  0xf1   :  { %v668_v24 = vpop.eup %667 }
  0xf2   :  { %v670_v25 = vpop.eup %669  ;;  %v581_v26 = vadd.f32 -1.0, %v668_v24 }
  0xf3   :  { %v580_v27 = vadd.f32 -1.0, %v670_v25 }
  0xf4   :  { %v157_v28 = vsel %vm147_vm3, %v143_v17, %v581_v26 }
  0xf5   :  { %v156_v29 = vsel %vm146_vm4, %v138_v19, %v580_v27 }
  0xf6   :  { %v649_v30 = vpack.c.bf16 %v157_v28, %v156_v29 }
  0xf8   :  { %650 = vmatpush3.bf16.msra.mxu1 %v649_v30 }
  0xf9   :  { %651 = vmatprep.subr.bf16.mxu1 %v702_v9 }
  0xfb   :  { %621 = vmatmul.mubr.msk.f32.vlgmr.msra.gmra.mrb[0].mxu1 %vm165_vm5, %v158_v31 }
  0xfc   :  { %653 = vmatpush3.bf16.msra.mxu1 %v649_v30  ;;  %627 = vmatprep.mubr.msk.f32.mxu1 %vm703_vm2, %v704_v10 }
  0xfd   :  { %655 = vmatprep.subr.bf16.mxu1 %v654_v1 }
  0xff   :  { %628 = vmatmul.mubr.msk.f32.vlgmr.msra.gmra.mrb[2].mxu1 %vm165_vm5, %v239_v32 }
 0x100   :  { %657 = vmatpush3.bf16.msra.mxu1 %v654_v1 }
 0x1ce   :  { %v235_v34 = vpop.f32.mrb[0].mxu1 }
 0x1cf   :  { %v622_v35 = vpop.f32.mrb[1].mxu1  ;;  %v236_v44 = vadd.f32 %v235_v34, %v163_v41 }
 0x1d2   :  { %v315_v37 = vpop.f32.mrb[2].mxu1 }
 0x1d3   :  { %v316_v38 = vadd.f32 %v315_v37, %v244_v36  ;;  %v629_v39 = vpop.f32.mrb[3].mxu1 }
 0x1d5   :  { %v319_v40 = vmul.f32 1.442695, %v316_v38 }
 0x1d7   :  { %671 = vpow2.f32 %v319_v40 }
 0x1e1   :  { %v672_v43 = vpop.eup %671 }
 0x1e2   :  { %v322_v45 = vmul.f32 %v672_v43, %v321_v42 }
 0x1e4   :  { %v323_v46 = vadd.f32 %v322_v45, %v236_v44 }
 0x1e6   :  { %630 = vmatprep.subr.msk.mxu0 %vm345_vm7, %v323_v46 }
 0x1e7   :  { %631 = vmatpush3.msk.msra.mxu0 %vm345_vm7, %v323_v46 }
 0x1e8   :  { %633 = vmatmul.mubr.msk.f32.vlgmr.msra.gmra.mrb[2].mxu0 %vm338_vm6, %v325_v47 }
 0x2bb   :  { %v634_v49 = vpop.f32.mrb[2].mxu0 }
 0x2bc   :  { %v421_v51 = vadd.f32 %v634_v49, %v336_v48  ;;  %v415_v52 = vpop.f32.mrb[3].mxu0 }
 0x2bd   :  { %v416_v53 = vadd.f32 %v415_v52, %v331_v50 }
 0x2be   :  { %v427_v54 = vmin.f32 %v421_v51, 0.0  ;;  %vm425_vm9 = vcmp.gt.f32.partialorder %v421_v51, 0.0 }
 0x2bf   :  { %v426_v55 = vmin.f32 %v416_v53, 0.0  ;;  %vm424_vm8 = vcmp.gt.f32.partialorder %v416_v53, 0.0 }
 0x2c0   :  { %v430_v56 = vmul.f32 1.442695, %v427_v54 }
 0x2c1   :  { %v428_v57 = vmul.f32 1.442695, %v426_v55 }
 0x2c2   :  { %673 = vpow2.f32 %v430_v56 }
 0x2c3   :  { %675 = vpow2.f32 %v428_v57 }
 0x2cc   :  { %v674_v58 = vpop.eup %673 }
 0x2cd   :  { %v676_v59 = vpop.eup %675  ;;  %v588_v0 = vadd.f32 -1.0, %v674_v58 }
 0x2ce   :  { %v587_v60 = vadd.f32 -1.0, %v676_v59 }
 0x2cf   :  { %v435_v2 = vsel %vm425_vm9, %v421_v51, %v588_v0 }
 0x2d0   :  { %v434_v63 = vsel %vm424_vm8, %v416_v53, %v587_v60 }
 0x2d1   :  { %445 = vxpose.xlu0.b32.start [1/2] (short) (narrow) %v434_v63, 16 }
 0x2d5   :  { %446 = vxpose.xlu0.b32.end [2/2] (short) (narrow) %v435_v2, 16 }
 0x351   :  { %v461_v3 = vpop.trf.xlu0 }
 0x352   :  { %639 = vmatprep.mubr.msk.f32.mxu1 %vm165_vm5, %v461_v3 }
 0x355   :  { %v462_v4 = vpop.trf.xlu0 }
 0x356   :  { %640 = vmatmul.mubr.msk.f32.vlgmr.msra.gmra.mrb[4].mxu1 %vm165_vm5, %v462_v4 }
 0x429   :  { %v641_v6 = vpop.f32.mrb[4].mxu1 }
 0x42a   :  { %v555_v7 = vadd.f32 %v641_v6, %v589_v5  ;;  %v549_v8 = vpop.f32.mrb[5].mxu1 }
 0x42b   :  { %v550_v9 = vadd.f32 %v589_v5, %v549_v8 }
 0x42c   :  { %559 = vst.msk [vmem:[#allocation2 + $0x8] sm:$0xff] %vm58_vm0, %v555_v7 }
 0x42d   :  { %558 = vst.msk [vmem:[#allocation2] sm:$0xff] %vm58_vm0, %v550_v9 }
 0x42e   :  { %688 = shalt.err (!%p685_p4)
}
 0x42f   :  { %s689_s13 = scalar_lea.hbm %s865_s12, 256 }
 0x430   :  { %p690_p5 = scmp.ne.s32.totalorder %s865_s12, %s689_s13  ;;  %p693_p6 = scmp.lt.u32.totalorder %s689_s13, %s865_s12 }
 0x432   :  { %p695_p7 = pnand %p693_p6, %p690_p5 }
 0x434   :  { %698 = shalt.err (!%p695_p7)
}
 0x435   :  { %s706_s17 = smov 128   ;;  %s707_s18 = smov 8  }
 0x436   :  { %571 = dma.vmem_to_hbm [thread:$0]  %s566_s0, 256, %s865_s12, [#allocation3], %s706_s17, %s706_s17, %s707_s18  }
 0x437   :  { %699 = dma.done.wait [#allocation3], 256  }
 0x438   :  { %700 = vsyncadd [#allocation3], 4294967040 }
 0x439   :  { %575 = vsyncpa [#allocation3], 1 }

</bundles_post_ra>
